<compile_context>
chip_gen: v7x
topology: tpu7x:2x2x1
jax: 0.10.0
libtpu: 0.0.40
codegen_flags: <defaults>
</compile_context>

<pallas_src>
import jax
import jax.numpy as jnp
from jax.experimental import pallas as pl
from jax.experimental.pallas import tpu as pltpu


# -----------------------------------------------------------------------------
# Path A: single HBM -> HBM DMA (no grid, no VMEM bounce).
# -----------------------------------------------------------------------------
def _dma_copy_kernel(x_hbm_ref, o_hbm_ref, sem):
    cp = pltpu.make_async_copy(x_hbm_ref, o_hbm_ref, sem)
    cp.start()
    cp.wait()


def _dma_identity(x: jax.Array) -> jax.Array:
    return pl.pallas_call(
        _dma_copy_kernel,
        out_shape=jax.ShapeDtypeStruct(x.shape, x.dtype),
        in_specs=[pl.BlockSpec(memory_space=pl.ANY)],
        out_specs=pl.BlockSpec(memory_space=pl.ANY),
        scratch_shapes=[pltpu.SemaphoreType.DMA],
    )(x)


# -----------------------------------------------------------------------------
# Path B: tiled streaming copy through VMEM (fallback / reference pipeline).
# -----------------------------------------------------------------------------
def _tile_copy_kernel(x_ref, o_ref):
    # Hot path: straight VMEM load + store of the current tile.
    o_ref[...] = x_ref[...]


def _sublane_multiple(itemsize: int) -> int:
    """Row alignment for dense vreg packing of this dtype width."""
    return {4: 8, 2: 16, 1: 32}.get(itemsize, 8)


def _vmem_budget():
    """(per-block bytes, explicit vmem limit) derived from this chip's VMEM."""
    cap = 64 << 20  # conservative default = v7x per-TC VMEM
    try:
        info = pltpu.get_tpu_info()
        cap = int(getattr(info, "vmem_capacity_bytes", cap)) or cap
    except Exception:
        pass
    # 2 input + 2 output double-buffered tiles must fit, with headroom for
    # Mosaic internal scratch:
    #   v7x   (64 MiB) -> 8 MiB blocks, 48 MiB limit
    #   v5e/v6e (128 MiB) -> 12 MiB blocks, 72 MiB limit
    block_bytes = max(1 << 20, min(12 << 20, cap // 8))
    vmem_limit = min((cap * 3) // 4, 6 * block_bytes)
    return block_bytes, int(vmem_limit)


def _lane_dense_2d(x: jax.Array) -> jax.Array:
    """Free (row-major) reshape to a 2-D view with a lane-dense last axis."""
    n = x.size
    for k in (32768, 16384, 8192, 4096, 2048, 1024, 512, 256, 128):
        if n % k == 0:
            return x.reshape(n // k, k)
    # Remainder case: keep the original trailing dim as the lane axis.
    if x.ndim >= 2:
        return x.reshape(-1, x.shape[-1])
    return x.reshape(1, n)


def _select_tiles(rows: int, cols: int, itemsize: int, block_bytes: int):
    """Pick (tr, tc) so tr*tc*itemsize <= block_bytes and the (8,128) rule holds."""
    sub = _sublane_multiple(itemsize)
    full_width_rows = block_bytes // max(1, cols * itemsize)
    if full_width_rows >= min(rows, sub):
        # Full lane extent (lane-dense stores); block over rows only.
        tc = cols
        tr = (full_width_rows // sub) * sub
        if tr >= rows or tr == 0:
            tr = rows  # full-extent row block is always legal
    else:
        # One sublane-group of full-width rows is already over budget:
        # tile the lane axis too (tc % 128 == 0 keeps stores unmasked).
        tr = rows if rows <= sub else sub
        tc = max(128, (block_bytes // max(1, tr * itemsize)) // 128 * 128)
        if tc >= cols:
            tc = cols
    return tr, tc


def _tiled_identity(x: jax.Array) -> jax.Array:
    orig_shape = x.shape
    x2 = _lane_dense_2d(x)
    rows, cols = x2.shape
    itemsize = jnp.dtype(x.dtype).itemsize

    block_bytes, vmem_limit = _vmem_budget()
    tr, tc = _select_tiles(rows, cols, itemsize, block_bytes)
    grid = (pl.cdiv(rows, tr), pl.cdiv(cols, tc))

    out2 = pl.pallas_call(
        _tile_copy_kernel,
        out_shape=jax.ShapeDtypeStruct((rows, cols), x.dtype),
        grid=grid,
        in_specs=[pl.BlockSpec((tr, tc), lambda i, j: (i, j))],
        out_specs=pl.BlockSpec((tr, tc), lambda i, j: (i, j)),
        # TODO(synk): benchmark pltpu.CORE_PARALLEL on the row axis on v7x --
        # only worth keeping if a single TensorCore's DMA doesn't already
        # saturate HBM bandwidth.
        compiler_params=pltpu.CompilerParams(
            dimension_semantics=("parallel", "parallel"),
            vmem_limit_bytes=vmem_limit,
        ),
    )(x2)
    return out2.reshape(orig_shape)


# -----------------------------------------------------------------------------
# Public entry point: MyModel.forward
# -----------------------------------------------------------------------------
_DMA_PATH_OK = True


def my_model_forward(x: jax.Array, *, copy: bool = True) -> jax.Array:
    """Pallas implementation of MyModel.forward (identity).

    copy=False: return x unchanged (zero HBM traffic).  Pair with
                jax.jit(..., donate_argnums=0) at the call site for the true
                zero-cost path -- a copy kernel can never beat it.
    copy=True : materialize a fresh buffer with the tuned copy kernels above.
    """
    global _DMA_PATH_OK
    if not copy:
        return x
    if x.ndim == 0 or x.size == 0:
        return x  # nothing to DMA; identical result for immutable JAX arrays
    if _DMA_PATH_OK:
        try:
            return _dma_identity(x)
        except Exception:
            _DMA_PATH_OK = False  # fall back to the tiled VMEM pipeline
    return _tiled_identity(x)


if __name__ == "__main__":
    key = jax.random.PRNGKey(0)
    k1, k2, k3 = jax.random.split(key, 3)

    # Small shapes consistent with the shape-agnostic identity module.
    x_f32 = jax.random.normal(k1, (2, 4, 16, 16), dtype=jnp.float32)
    x_bf16 = jax.random.normal(k2, (2, 48, 256), dtype=jnp.bfloat16)
    x_1d = jax.random.normal(k3, (1000,), dtype=jnp.float32)  # not 128-aligned

    # Primary path (HBM->HBM DMA, with automatic fallback to the tiled copy).
    y_f32 = my_model_forward(x_f32)
    y_bf16 = my_model_forward(x_bf16)
    y_1d = my_model_forward(x_1d)

    # Exercise the tiled VMEM pipeline explicitly as well.
    z_f32 = _tiled_identity(x_f32)
    z_bf16 = _tiled_identity(x_bf16)
    z_1d = _tiled_identity(x_1d)

    # Zero-copy (donation-friendly) path.
    w = my_model_forward(x_f32, copy=False)

    jax.block_until_ready((y_f32, y_bf16, y_1d, z_f32, z_bf16, z_1d, w))

    for ref, got in (
        (x_f32, y_f32),
        (x_bf16, y_bf16),
        (x_1d, y_1d),
        (x_f32, z_f32),
        (x_bf16, z_bf16),
        (x_1d, z_1d),
        (x_f32, w),
    ):
        assert got.shape == ref.shape and got.dtype == ref.dtype
        assert jnp.array_equal(got, ref)

    print("KERNEL_OK")
</pallas_src>

<mosaic_0001>
module attributes {stable_mosaic.version = 11 : i64} {
  func.func @_dma_copy_kernel(%arg0: memref<2x4x16x16xf32, #tpu.memory_space<any>>, %arg1: memref<2x4x16x16xf32, #tpu.memory_space<any>>, %arg2: memref<!tpu.dma_semaphore, #tpu.memory_space<semaphore_mem>>) attributes {dimension_semantics = [], scalar_prefetch = 0 : i64, scratch_operands = 1 : i64, tpu.core_type = #tpu.core_type<tc>} {
    tpu.enqueue_dma source(%arg0 : memref<2x4x16x16xf32, #tpu.memory_space<any>>) target(%arg1 : memref<2x4x16x16xf32, #tpu.memory_space<any>>) target_semaphore(%arg2 : memref<!tpu.dma_semaphore, #tpu.memory_space<semaphore_mem>>)
    tpu.wait_dma2 semaphore(%arg2 : memref<!tpu.dma_semaphore, #tpu.memory_space<semaphore_mem>>) src(%arg0 : memref<2x4x16x16xf32, #tpu.memory_space<any>>) dst(%arg1 : memref<2x4x16x16xf32, #tpu.memory_space<any>>)
    return
  }
}

module attributes {stable_mosaic.version = 11 : i64} {
  func.func @_tile_copy_kernel(%arg0: i32, %arg1: i32, %arg2: memref<1x2048xf32, #tpu.memory_space<vmem>>, %arg3: memref<1x2048xf32, #tpu.memory_space<vmem>>) attributes {dimension_semantics = [#tpu.dimension_semantics<parallel>, #tpu.dimension_semantics<parallel>], iteration_bounds = array<i64: 1, 1>, scalar_prefetch = 0 : i64, scratch_operands = 0 : i64, tpu.core_type = #tpu.core_type<tc>, window_params = [{transform_indices = @transform_0, window_bounds = array<i64: 1, 2048>}, {transform_indices = @transform_1, window_bounds = array<i64: 1, 2048>}]} {
    %c0 = arith.constant 0 : index
    %c0_0 = arith.constant 0 : index
    %0 = vector.load %arg2[%c0, %c0_0] : memref<1x2048xf32, #tpu.memory_space<vmem>>, vector<1x2048xf32>
    %c0_1 = arith.constant 0 : index
    %c0_2 = arith.constant 0 : index
    %1 = vector.load %arg3[%c0_1, %c0_2] : memref<1x2048xf32, #tpu.memory_space<vmem>>, vector<1x2048xf32>
    tpu.vector_store %arg3[%c0_1, %c0_2], %0 {strides = array<i32>} : memref<1x2048xf32, #tpu.memory_space<vmem>>, vector<1x2048xf32>,
    return
  }
  func.func @transform_0(%arg0: i32, %arg1: i32) -> (i32, i32) {
    %c0_i32 = arith.constant 0 : i32
    return %arg0, %arg1 : i32, i32
  }
  func.func @transform_1(%arg0: i32, %arg1: i32) -> (i32, i32) {
    %c0_i32 = arith.constant 0 : i32
    return %arg0, %arg1 : i32, i32
  }
}

</mosaic_0001>

<bundles_post_ra>
// kernel: tpu_custom_call.1
= control target key start
LH: loop header
LB: loop body
LE: loop exit
PB: predicated region body
PF: predicated region fallthrough
CT: control target
= control target key end

     0   :  { %s36_s6 = smov [#allocation2]   ;;  %s37_s7 = smov [#allocation3]   ;;  %s55_s0 = inlined_call_operand.hbm [shape: f32[2,4,16,16], index: 0, kind: input, shape index: {}]   ;;  %s56_s1 = inlined_call_operand.hbm [shape: f32[2,4,16,16], index: 1, kind: output, shape index: {}]  }
   0x1   :  { %s38_s8 = smov 0  }
   0x2   :  { %18 = dma.general %s55_s0, 2048, %s56_s1, %s36_s6, %s37_s7, [#allocation4], %s38_s8, 0  }
   0x3   :  { %34 = dma.done.wait [#allocation2], 2048 }
   0x4   :  { %35 = vsyncadd [#allocation2], 4294965248 }
   0x5   :  { %24 = vsyncmov [#allocation2] }
   0x8   :  { %s25_s13 = vpop.sfrf %24 }
   0x9   :  { %p30_p0 = scmp.ne.s32.totalorder %s25_s13, 0 }
   0xb   :  { %29 = shalt.err (%p30_p0)  }

// kernel: tpu_custom_call.1
= control target key start
LH: loop header
LB: loop body
LE: loop exit
PB: predicated region body
PF: predicated region fallthrough
CT: control target
= control target key end

     0   :  { %6 = vsyncpa [#allocation3], 0  ;;  %s126_s0 = inlined_call_operand.hbm [shape: f32[1,2048], index: 0, kind: input, shape index: {}]   ;;  %s127_s1 = inlined_call_operand.hbm [shape: f32[1,2048], index: 1, kind: output, shape index: {}]  }
   0x1   :  { %7 = vsyncpa [#allocation4], 0  ;;  %s90_s6 = smov [#allocation2]   ;;  %s42_s10 = scalar_lea.hbm %s126_s0, 256 }
   0x2   :  { %s14_s7 = sshll.u32 %s90_s6, 4  ;;  %p43_p0 = scmp.ne.s32.totalorder %s126_s0, %s42_s10  ;;  %s15_s7 = int_to_ptr.vmem [resolvable:$true] %s14_s7 }
   0x3   :  { %p46_p1 = scmp.lt.u32.totalorder %s42_s10, %s126_s0 }
   0x5   :  { %p48_p2 = pnand %p46_p1, %p43_p0 }
   0x7   :  { %51 = shalt.err (!%p48_p2)
}
   0x8   :  { %s52_s15 = scalar_lea.vmem %s15_s7, 256  ;;  %p57_p4 = scmp.lt.s32.totalorder %s15_s7, %s15_s7 }
   0x9   :  { %p53_p3 = scmp.ne.s32.totalorder %s15_s7, %s52_s15  ;;  %p58_p5 = scmp.lt.s32.totalorder %s52_s15, %s52_s15 }
   0xb   :  { %p59_p6 = por %p58_p5, %p57_p4 }
   0xd   :  { %p60_p7 = pnand %p59_p6, %p53_p3 }
   0xf   :  { %63 = shalt.err (!%p60_p7)
}
  0x10   :  { %17 = dma.hbm_to_vmem [thread:$0]  %s126_s0, 256, %s15_s7, [#allocation3]  }
  0x11   :  { %86 = dma.done.wait [#allocation3], 256  }
  0x12   :  { %87 = vsyncadd [#allocation3], 4294967040  ;;  %s91_s18 = smov [#allocation5]   ;;  %v21_v0 = vld [vmem:[#allocation2] sm:$0xff]  ;;  %v22_v1 = vld [vmem:[#allocation2 + $0x8] sm:$0xff] }
  0x13   :  { %s31_s19 = sshll.u32 %s91_s18, 4  ;;  %23 = vst [vmem:[#allocation5] sm:$0xff] %v21_v0  ;;  %24 = vst [vmem:[#allocation5 + $0x8] sm:$0xff] %v22_v1  ;;  %s32_s19 = int_to_ptr.vmem [resolvable:$true] %s31_s19 }
  0x14   :  { %s64_s20 = scalar_lea.vmem %s32_s19, 256  ;;  %p69_p9 = scmp.lt.s32.totalorder %s32_s19, %s32_s19 }
  0x15   :  { %p65_p8 = scmp.ne.s32.totalorder %s32_s19, %s64_s20  ;;  %p70_p10 = scmp.lt.s32.totalorder %s64_s20, %s64_s20 }
  0x17   :  { %p71_p11 = por %p70_p10, %p69_p9 }
  0x19   :  { %p72_p12 = pnand %p71_p11, %p65_p8 }
  0x1b   :  { %75 = shalt.err (!%p72_p12)
}
  0x1c   :  { %s76_s0 = scalar_lea.hbm %s127_s1, 256 }
  0x1d   :  { %p77_p13 = scmp.ne.s32.totalorder %s127_s1, %s76_s0  ;;  %p80_p0 = scmp.lt.u32.totalorder %s76_s0, %s127_s1 }
  0x1f   :  { %p82_p1 = pnand %p80_p0, %p77_p13 }
  0x21   :  { %85 = shalt.err (!%p82_p1)
}
  0x22   :  { %34 = dma.vmem_to_hbm [thread:$0]  %s32_s19, 256, %s127_s1, [#allocation4]  }
  0x23   :  { %88 = dma.done.wait [#allocation4], 256  }
  0x24   :  { %89 = vsyncadd [#allocation4], 4294967040 }
  0x25   :  { %38 = vsyncpa [#allocation3], 1 }
  0x26   :  { %39 = vsyncpa [#allocation4], 1 }

</bundles_post_ra>
